<compile_context>
chip_gen: v7x
topology: tpu7x:2x2x1
jax: 0.10.0
libtpu: 0.0.40
codegen_flags: <defaults>
</compile_context>

<pallas_src>
import jax
import jax.numpy as jnp
from jax import lax
from jax.experimental import pallas as pl
from jax.experimental.pallas import tpu as pltpu


def _round_up(n, m):
    return ((n + m - 1) // m) * m


def _tpu_budgets():
    """(per-x-buffer bytes, scoped VMEM limit bytes) — generation-aware with a safe fallback."""
    try:
        cap = int(pltpu.get_tpu_info().vmem_capacity_bytes)
    except Exception:
        cap = 64 << 20  # conservative (v7x-sized)
    if cap >= (96 << 20):          # v5e / v6e: 128 MiB physical VMEM
        return 16 << 20, 96 << 20
    return 8 << 20, 48 << 20       # v7x (64 MiB) and unknown chips: stay conservative


_X_BUF_BYTES, _VMEM_LIMIT_BYTES = _tpu_budgets()

_FEATURE_TILE_CAP = 2048   # lane tile when F must be tiled (multiple of 128)
_MIN_SPLIT_ROWS = 128      # split batch into >=2 parallel tiles only if each half >= this many rows


def _choose_tiles(B, F, itemsize):
    """Pick (batch_tile, feature_tile) that divide into real dims with no padding of x."""
    # Feature tile: take the whole feature dim when it fits (collapses the reduction axis);
    # otherwise tile by a 128-multiple and mask the ragged tail in-kernel.
    tf = F if F <= _FEATURE_TILE_CAP else _FEATURE_TILE_CAP
    # Batch tile sized in bytes against the per-buffer VMEM budget (Pallas double-buffers it).
    tb_max = max(8, (_X_BUF_BYTES // (tf * itemsize)) // 8 * 8)
    if B <= 8:
        return B, tf                      # full-dim block (always legal)
    b8 = _round_up(B, 8)
    if b8 > tb_max:
        return tb_max, tf                 # >= 2 batch tiles automatically
    if b8 >= 2 * _MIN_SPLIT_ROWS:
        # >= 2 batch tiles so the "parallel" axis shards across both v7x TensorCores.
        return _round_up((B + 1) // 2, 8), tf
    return B, tf                          # single full-dim batch tile


def _sigmoid(z):
    # Numerically stable sigmoid on the EUP (tanh form); equal to jax.nn.sigmoid.
    return 0.5 * (jnp.tanh(0.5 * z) + 1.0)


def _make_single_block_kernel():
    """F fits in one tile: 1-D grid over batch, no accumulator, no epilogue."""
    def kernel(x_ref, w_ref, b_ref, o_ref):
        # x_ref: (TB, F) VMEM   w_ref: (1, F) VMEM   b_ref: (1,) SMEM   o_ref: (TB, 1) VMEM
        z = jnp.sum(x_ref[...] * w_ref[...], axis=-1, keepdims=True) + b_ref[0]
        o_ref[...] = _sigmoid(z).astype(o_ref.dtype)
    return kernel


def _make_multi_block_kernel(F, tf):
    """F is tiled: 2-D grid (batch, feature); f32 accumulator; ragged feature tail masked."""
    ragged = (F % tf) != 0

    def kernel(x_ref, w_ref, b_ref, o_ref, acc_ref):
        # x_ref: (TB, TF) VMEM   w_ref: (1, TF) VMEM   b_ref: (1,) SMEM
        # o_ref: (TB, 1) VMEM    acc_ref: (TB, 1) f32 VMEM scratch
        k = pl.program_id(1)

        @pl.when(k == 0)
        def _init():
            acc_ref[...] = jnp.zeros_like(acc_ref)

        p = x_ref[...] * w_ref[...]            # VPU multiply, no relayout of the big x tile
        if ragged:
            # Zero out-of-bounds feature columns of the last block (stale VMEM garbage in both
            # the x and w tails); where() returns 0 even if the stale product is NaN/Inf.
            col = lax.broadcasted_iota(jnp.int32, (1, tf), 1) + k * tf
            p = jnp.where(col < F, p, 0.0)
        acc_ref[...] += jnp.sum(p, axis=-1, keepdims=True)   # XLU lane reduction

        @pl.when(k == pl.num_programs(1) - 1)
        def _finalize():
            z = acc_ref[...] + b_ref[0]
            o_ref[...] = _sigmoid(z).astype(o_ref.dtype)

    return kernel


@jax.jit
def logistic_regression_forward(x, weight, bias):
    """x: (B, F) f32, weight: (1, F) f32 (nn.Linear layout), bias: (1,) f32 -> (B, 1) f32."""
    B, F = x.shape
    x = x.astype(jnp.float32)
    weight = jnp.reshape(weight, (1, F)).astype(jnp.float32)
    bias1 = jnp.reshape(bias, (1,)).astype(jnp.float32)

    tb, tf = _choose_tiles(B, F, 4)
    nkb = pl.cdiv(B, tb)
    nkf = pl.cdiv(F, tf)

    if nkf == 1:
        grid = (nkb,)
        in_specs = [
            pl.BlockSpec((tb, F), lambda i: (i, 0)),             # x tiles (pipelined)
            pl.BlockSpec((1, F), lambda i: (0, 0)),              # weight row (resident)
            pl.BlockSpec(memory_space=pltpu.MemorySpace.SMEM),   # bias scalar in SMEM
        ]
        out_specs = pl.BlockSpec((tb, 1), lambda i: (i, 0))
        scratch_shapes = []
        kernel = _make_single_block_kernel()
        dim_sem = ("parallel",)
    else:
        grid = (nkb, nkf)  # reduction (feature) axis last
        in_specs = [
            pl.BlockSpec((tb, tf), lambda i, k: (i, k)),         # x tiles (pipelined)
            pl.BlockSpec((1, tf), lambda i, k: (0, k)),          # weight row tiles
            pl.BlockSpec(memory_space=pltpu.MemorySpace.SMEM),   # bias scalar in SMEM
        ]
        out_specs = pl.BlockSpec((tb, 1), lambda i, k: (i, 0))
        scratch_shapes = [pltpu.VMEM((tb, 1), jnp.float32)]      # partial-sum accumulator
        kernel = _make_multi_block_kernel(F, tf)
        dim_sem = ("parallel", "arbitrary")

    return pl.pallas_call(
        kernel,
        out_shape=jax.ShapeDtypeStruct((B, 1), jnp.float32),
        grid_spec=pltpu.PrefetchScalarGridSpec(
            num_scalar_prefetch=0,
            grid=grid,
            in_specs=in_specs,
            out_specs=out_specs,
            scratch_shapes=scratch_shapes,
        ),
        compiler_params=pltpu.CompilerParams(
            dimension_semantics=dim_sem,
            vmem_limit_bytes=_VMEM_LIMIT_BYTES,
        ),
    )(x, weight, bias1)


if __name__ == "__main__":
    key = jax.random.PRNGKey(0)
    kx, kw, kb = jax.random.split(key, 3)

    # Small correctness-check shapes (benchmark at production B*F, not these toy sizes).
    batch = 8
    n_features = 32

    x = jax.random.normal(kx, (batch, n_features), dtype=jnp.float32)
    weight = jax.random.normal(kw, (1, n_features), dtype=jnp.float32) * 0.1
    bias = jax.random.normal(kb, (1,), dtype=jnp.float32) * 0.1

    out = jax.block_until_ready(logistic_regression_forward(x, weight, bias))
    ref = jax.nn.sigmoid(x @ weight.T + bias.reshape(1, 1))
    assert out.shape == (batch, 1)
    assert jnp.allclose(out, ref, atol=1e-5, rtol=1e-5)

    # Second check: exercises the tiled-feature path (reduction grid axis + ragged-tail mask).
    b2, f2 = 13, 2500
    k2x, k2w, k2b = jax.random.split(jax.random.PRNGKey(1), 3)
    x2 = jax.random.normal(k2x, (b2, f2), dtype=jnp.float32)
    w2 = jax.random.normal(k2w, (1, f2), dtype=jnp.float32) * 0.02
    b2v = jax.random.normal(k2b, (1,), dtype=jnp.float32) * 0.1
    out2 = jax.block_until_ready(logistic_regression_forward(x2, w2, b2v))
    ref2 = jax.nn.sigmoid(x2 @ w2.T + b2v.reshape(1, 1))
    assert out2.shape == (b2, 1)
    assert jnp.allclose(out2, ref2, atol=1e-4, rtol=1e-4)

    print("KERNEL_OK")
</pallas_src>

<mosaic_0001>
module attributes {stable_mosaic.version = 11 : i64} {
  func.func @kernel(%arg0: i32, %arg1: memref<8x32xf32, #tpu.memory_space<vmem>>, %arg2: memref<1x32xf32, #tpu.memory_space<vmem>>, %arg3: memref<1xf32, #tpu.memory_space<smem>>, %arg4: memref<8x1xf32, #tpu.memory_space<vmem>>) attributes {dimension_semantics = [#tpu.dimension_semantics<parallel>], iteration_bounds = array<i64: 1>, scalar_prefetch = 0 : i64, scratch_operands = 0 : i64, tpu.core_type = #tpu.core_type<tc>, window_params = [{transform_indices = @transform_0, window_bounds = array<i64: 8, 32>}, {pipeline_mode = #tpu.pipeline_mode<synchronous>, transform_indices = @transform_1, window_bounds = array<i64: 1, 32>}, {transform_indices = @transform_2, window_bounds = array<i64: 1>}, {transform_indices = @transform_3, window_bounds = array<i64: 8, 1>}]} {
    %c0 = arith.constant 0 : index
    %c0_0 = arith.constant 0 : index
    %0 = vector.load %arg1[%c0, %c0_0] : memref<8x32xf32, #tpu.memory_space<vmem>>, vector<8x32xf32>
    %c0_1 = arith.constant 0 : index
    %c0_2 = arith.constant 0 : index
    %1 = vector.load %arg2[%c0_1, %c0_2] : memref<1x32xf32, #tpu.memory_space<vmem>>, vector<1x32xf32>
    %2 = vector.broadcast %1 : vector<1x32xf32> to vector<8x32xf32>
    %3 = arith.mulf %0, %2 : vector<8x32xf32>
    %cst = arith.constant dense<0.000000e+00> : vector<8xf32>
    %4 = vector.multi_reduction <add>, %3, %cst [1] : vector<8x32xf32> to vector<8xf32>
    %5 = vector.shape_cast %4 : vector<8xf32> to vector<8x1xf32>
    %c0_3 = arith.constant 0 : index
    %6 = memref.load %arg3[%c0_3] : memref<1xf32, #tpu.memory_space<smem>>
    %7 = vector.broadcast %6 : f32 to vector<8x1xf32>
    %8 = arith.addf %5, %7 : vector<8x1xf32>
    %cst_4 = arith.constant 5.000000e-01 : f32
    %9 = vector.broadcast %cst_4 : f32 to vector<8x1xf32>
    %10 = arith.mulf %9, %8 : vector<8x1xf32>
    %11 = math.tanh %10 : vector<8x1xf32>
    %cst_5 = arith.constant 1.000000e+00 : f32
    %12 = vector.broadcast %cst_5 : f32 to vector<8x1xf32>
    %13 = arith.addf %11, %12 : vector<8x1xf32>
    %cst_6 = arith.constant 5.000000e-01 : f32
    %14 = vector.broadcast %cst_6 : f32 to vector<8x1xf32>
    %15 = arith.mulf %14, %13 : vector<8x1xf32>
    %c0_7 = arith.constant 0 : index
    %c0_8 = arith.constant 0 : index
    %16 = vector.load %arg4[%c0_7, %c0_8] : memref<8x1xf32, #tpu.memory_space<vmem>>, vector<8x1xf32>
    tpu.vector_store %arg4[%c0_7, %c0_8], %15 {strides = array<i32>} : memref<8x1xf32, #tpu.memory_space<vmem>>, vector<8x1xf32>,
    return
  }
  func.func @transform_0(%arg0: i32) -> (i32, i32) {
    %c0_i32 = arith.constant 0 : i32
    %c0_i32_0 = arith.constant 0 : i32
    return %arg0, %c0_i32 : i32, i32
  }
  func.func @transform_1(%arg0: i32) -> (i32, i32) {
    %c0_i32 = arith.constant 0 : i32
    %c0_i32_0 = arith.constant 0 : i32
    %c0_i32_1 = arith.constant 0 : i32
    return %c0_i32, %c0_i32_0 : i32, i32
  }
  func.func @transform_2(%arg0: i32) -> i32 {
    %c0_i32 = arith.constant 0 : i32
    %c0_i32_0 = arith.constant 0 : i32
    return %c0_i32 : i32
  }
  func.func @transform_3(%arg0: i32) -> (i32, i32) {
    %c0_i32 = arith.constant 0 : i32
    %c0_i32_0 = arith.constant 0 : i32
    return %arg0, %c0_i32 : i32, i32
  }
}

</mosaic_0001>

<bundles_post_ra>
// kernel: logistic_regression_forward.1
= control target key start
LH: loop header
LB: loop body
LE: loop exit
PB: predicated region body
PF: predicated region fallthrough
CT: control target
= control target key end

     0   :  { %9 = vsyncpa [#allocation4], 0  ;;  %s82_s12 = smov [#allocation3]   ;;  %s124_s0 = inlined_call_operand.hbm [shape: f32[8,32], index: 0, kind: input, shape index: {}]   ;;  %s125_s1 = inlined_call_operand.vmem [shape: f32[1,32], index: 1, kind: input, shape index: {}]   ;;  %s126_s2 = inlined_call_operand.<no memory space> [shape: f32[1], index: 2, kind: input, shape index: {}]   ;;  %s127_s3 = inlined_call_operand.vmem [shape: f32[8,1], index: 3, kind: output, shape index: {}]  }
   0x1   :  { %s16_s13 = sshll.u32 %s82_s12, 4  ;;  %s58_s16 = scalar_lea.hbm %s124_s0, 128  ;;  %s17_s13 = int_to_ptr.vmem [resolvable:$true] %s16_s13 }
   0x2   :  { %p59_p0 = scmp.ne.s32.totalorder %s124_s0, %s58_s16  ;;  %p62_p1 = scmp.lt.u32.totalorder %s58_s16, %s124_s0 }
   0x4   :  { %p64_p2 = pnand %p62_p1, %p59_p0 }
   0x6   :  { %67 = shalt.err (!%p64_p2)
}
   0x7   :  { %s68_s21 = scalar_lea.vmem %s17_s13, 128  ;;  %p73_p4 = scmp.lt.s32.totalorder %s17_s13, %s17_s13 }
   0x8   :  { %p69_p3 = scmp.ne.s32.totalorder %s17_s13, %s68_s21  ;;  %p74_p5 = scmp.lt.s32.totalorder %s68_s21, %s68_s21 }
   0xa   :  { %p75_p6 = por %p74_p5, %p73_p4 }
   0xc   :  { %p76_p7 = pnand %p75_p6, %p69_p3 }
   0xe   :  { %79 = shalt.err (!%p76_p7)
}
   0xf   :  { %19 = dma.hbm_to_vmem [thread:$0]  %s124_s0, 128, %s17_s13, [#allocation4]  }
  0x10   :  { %80 = dma.done.wait [#allocation4], 128  }
  0x11   :  { %81 = vsyncadd [#allocation4], 4294967168  ;;  %v27_v0 = vld [vmem:[#allocation3] sm:$0xff]  ;;  %vm36_vm0 = vcmask 261120   ;;  %v41_v4 = vstv %s126_s2  ;;  %vm47_vm1 = vcmask 7168  }
  0x12   :  { %v54_v1 = vld [vmem:[%s125_s1] ss:$0 sm:$0xff] }
  0x13   :  { %v35_v2 = vmul.f32 %v54_v1, %v27_v0 }
  0x15   :  { %v37_v3 = vsel %vm36_vm0, %v35_v2, 0.0 }
  0x16   :  { %38 = vadd.xlane.f32.xlu0 %v37_v3 }
  0xa3   :  { %v39_v5 = vpop.xlane.xlu0 %38 }
  0xa4   :  { %v42_v6 = vadd.f32 %v41_v4, %v39_v5 }
  0xa6   :  { %v43_v7 = vmul.f32 0.5, %v42_v6 }
  0xa8   :  { %56 = vtanh.f32 %v43_v7 }
  0xb2   :  { %v57_v8 = vpop.eup %56 }
  0xb3   :  { %v45_v9 = vadd.f32 1.0, %v57_v8 }
  0xb5   :  { %v46_v10 = vmul.f32 0.5, %v45_v9 }
  0xb7   :  { %48 = vst.msk [vmem:[%s127_s3] sm:$0xff] %vm47_vm1, %v46_v10 }
  0xb8   :  { %53 = vsyncpa [#allocation4], 1 }

</bundles_post_ra>
